<compile_context>
chip_gen: v5e
topology: v5e:2x2
jax: 0.10.0
libtpu: 0.0.40
codegen_flags: <defaults>
</compile_context>

<pallas_src>
import functools

import jax
import jax.numpy as jnp
from jax.experimental import pallas as pl
from jax.experimental.pallas import tpu as pltpu

_ROW = 16     # row-tile alignment (bf16 sublane packing -> also fine for f32)
_LANE = 128   # lane width; every feature dimension is zero-padded to this


def _round_up(x, m):
    return ((x + m - 1) // m) * m


def _cdiv(a, b):
    return -(-a // b)


# --------------------------------------------------------------------------
# Kernel
# --------------------------------------------------------------------------
def _generator_kernel(offsets, x_ref, *refs):
    """Fused Generator forward for one row tile.

    refs = (w_0, b_0, ..., w_{k-1}, b_{k-1}, w_last, b_last, o_ref, act_ref)
      w_i : bf16 (in_pad_i, d_pad_i)   -- BN affine already folded in
      b_i : f32  (1, d_pad_i)
    act_ref: persistent bf16 VMEM scratch, feature layout [h_k|...|h_1|x0];
    offsets[i] is the static, 128-aligned start column of block i's input.
    """
    *param_refs, o_ref, act_ref = refs

    # Stage the (already bf16) input rows into the tail of the scratch.
    act_ref[:, offsets[0]:] = x_ref[...]

    n_res = len(offsets) - 1
    idx = 0
    for i in range(n_res):
        off_in, off_out = offsets[i], offsets[i + 1]
        w = param_refs[idx][...]                 # bf16 (total - off_in, d_pad)
        b = param_refs[idx + 1][...]             # f32  (1, d_pad)
        idx += 2
        # Linear(+folded BN) on the MXU, f32 accumulation; bias + ReLU on VPU.
        z = jnp.dot(act_ref[:, off_in:], w,
                    preferred_element_type=jnp.float32) + b
        # torch.cat([h, x]) becomes a static 128-aligned slice store.
        act_ref[:, off_out:off_in] = jnp.maximum(z, 0.0).astype(jnp.bfloat16)

    w = param_refs[idx][...]
    b = param_refs[idx + 1][...]
    out = jnp.dot(act_ref[:, offsets[n_res]:], w,
                  preferred_element_type=jnp.float32) + b
    o_ref[...] = out.astype(o_ref.dtype)


# --------------------------------------------------------------------------
# One-time host-side parameter re-layout (hoisted out of the forward path)
# --------------------------------------------------------------------------
def _pad_weight(w_t, segs, d, d_pad):
    """Re-lay a (sum(sizes), d) weight onto the padded concat layout.

    `segs` lists (size, padded_size) activation segments in order
    [h_{i-1}, ..., h_1, x0]. Padding rows/cols are zero -> numerically exact.
    """
    in_pad = sum(p for _, p in segs)
    wp = jnp.zeros((in_pad, d_pad), jnp.float32)
    ro = po = 0
    for s, p in segs:
        wp = wp.at[po:po + s, :d].set(w_t[ro:ro + s, :])
        ro += s
        po += p
    return wp


def _pad_row(v, d, d_pad):
    return jnp.zeros((1, d_pad), jnp.float32).at[0, :d].set(
        jnp.asarray(v, jnp.float32))


def prepare_params(res_params, final_params, embedding_dim, *, eps=1e-5):
    """Fold BN into the Linear params and pad everything to the kernel layout.

    res_params:   list of (W, b, gamma, beta, running_mean, running_var),
                  W in PyTorch layout (out_features, in_features).
    final_params: (W_last, b_last), same layout.
    """
    e_pad = _round_up(embedding_dim, _LANE)
    segs = [(embedding_dim, e_pad)]          # activation layout, tail first
    flat = []
    d_pads = []
    for (w, b, gamma, beta, mean, var) in res_params:
        d = w.shape[0]
        d_pad = _round_up(d, _LANE)
        scale = jnp.asarray(gamma, jnp.float32) / jnp.sqrt(
            jnp.asarray(var, jnp.float32) + eps)
        shift = jnp.asarray(beta, jnp.float32) - jnp.asarray(mean, jnp.float32) * scale
        # Fold BN affine + bias in f32 BEFORE the bf16 cast.
        w_fold = jnp.asarray(w, jnp.float32).T * scale[None, :]
        b_fold = jnp.asarray(b, jnp.float32) * scale + shift
        flat += [_pad_weight(w_fold, segs, d, d_pad).astype(jnp.bfloat16),
                 _pad_row(b_fold, d, d_pad)]
        segs = [(d, d_pad)] + segs
        d_pads.append(d_pad)

    w_last, b_last = final_params
    data_dim = w_last.shape[0]
    # NOTE: 128-lane padding is optimal on v5e; on v6e/v7x hidden sizes that
    # are multiples of 256 would fill the 256-wide MXU better (model choice).
    out_pad = _round_up(data_dim, _LANE)
    flat += [_pad_weight(jnp.asarray(w_last, jnp.float32).T, segs,
                         data_dim, out_pad).astype(jnp.bfloat16),
             _pad_row(b_last, data_dim, out_pad)]

    total_in_pad = sum(p for _, p in segs)
    offsets = [total_in_pad - e_pad]
    for d_pad in d_pads:
        offsets.append(offsets[-1] - d_pad)

    return dict(flat=tuple(flat), offsets=tuple(int(o) for o in offsets),
                embedding_dim=int(embedding_dim), e_pad=int(e_pad),
                data_dim=int(data_dim), out_pad=int(out_pad),
                total_in_pad=int(total_in_pad))


# --------------------------------------------------------------------------
# Forward wrapper
# --------------------------------------------------------------------------
def generator_forward(input_, packed, *, tm_max=None):
    flat = packed["flat"]
    offsets = packed["offsets"]
    e = packed["embedding_dim"]
    e_pad, out_pad = packed["e_pad"], packed["out_pad"]
    data_dim, total = packed["data_dim"], packed["total_in_pad"]
    n = input_.shape[0]
    assert input_.shape[1] == e, (input_.shape, e)

    # ---- chip-aware VMEM budgeting / row-tile selection --------------------
    try:
        vmem_cap = int(pltpu.get_tpu_info().vmem_capacity_bytes)
    except Exception:
        vmem_cap = 64 << 20                        # conservative (v7x per-TC)
    if tm_max is None:
        tm_max = 1024 if vmem_cap >= (100 << 20) else 512   # v6e vs v5e/v7x
    tm_max = max(_ROW, _round_up(tm_max, _ROW))
    budget = max(24 << 20, min(40 << 20, vmem_cap // 2))

    param_bytes = sum(int(p.size) * p.dtype.itemsize for p in flat)

    def vmem_need(tm):
        return (2 * tm * e_pad * 2          # bf16 input block, double-buffered
                + 2 * tm * out_pad * 4      # f32 output block, double-buffered
                + tm * total * 2            # bf16 activation scratch
                + 2 * param_bytes           # resident params (worst case 2x)
                + tm * max(out_pad, _LANE) * 4)   # f32 temporaries headroom

    n_al = _round_up(n, _ROW)
    tm = min(tm_max, n_al)
    while tm > _ROW and vmem_need(tm) > budget:
        tm -= _ROW
    # Balance tiles so the last one isn't mostly padding, and give the
    # "parallel" row axis >= 2 steps when possible (v7x: 2 TensorCores/chip).
    num_tiles = _cdiv(n_al, tm)
    if num_tiles == 1 and n_al >= 2 * _ROW:
        num_tiles = 2
    tm = _round_up(_cdiv(n_al, num_tiles), _ROW)
    rows_pad = tm * num_tiles

    hi = min(48 << 20, (vmem_cap * 3) // 4)
    vmem_limit = int(min(hi, max(32 << 20, vmem_need(tm) + (4 << 20))))

    # bf16, lane-dense, row-padded input (padding rows/cols are zero).
    x = jnp.zeros((rows_pad, e_pad), jnp.bfloat16)
    x = x.at[:n, :e].set(input_.astype(jnp.bfloat16))

    kernel = functools.partial(_generator_kernel, offsets)
    x_spec = pl.BlockSpec((tm, e_pad), lambda i: (i, 0))
    out_spec = pl.BlockSpec((tm, out_pad), lambda i: (i, 0))

    def call(single_buffer_params):
        if single_buffer_params:
            # Constant index_map -> params never re-fetched across row tiles;
            # single buffering halves their resident VMEM footprint.
            param_specs = [pl.BlockSpec(p.shape, lambda i: (0, 0),
                                        pipeline_mode=pl.Buffered(1))
                           for p in flat]
        else:
            param_specs = [pl.BlockSpec(p.shape, lambda i: (0, 0))
                           for p in flat]
        fn = pl.pallas_call(
            kernel,
            out_shape=jax.ShapeDtypeStruct((rows_pad, out_pad), jnp.float32),
            grid=(num_tiles,),
            in_specs=[x_spec] + param_specs,
            out_specs=out_spec,
            scratch_shapes=[pltpu.VMEM((tm, total), jnp.bfloat16)],
            compiler_params=pltpu.CompilerParams(
                dimension_semantics=("parallel",),
                vmem_limit_bytes=vmem_limit),
        )
        return jax.block_until_ready(fn(x, *flat))

    try:
        out = call(True)
    except Exception:
        # pl.Buffered / pipeline_mode not supported by this jax version:
        # fall back to default double-buffered resident parameter blocks.
        out = call(False)

    return out[:n, :data_dim]


# --------------------------------------------------------------------------
# Synthetic params + pure-JAX reference (for validation)
# --------------------------------------------------------------------------
def init_params(key, embedding_dim, generator_dim, data_dim):
    """Deterministic synthetic params mirroring the PyTorch module's shapes."""
    res_params = []
    dim = embedding_dim
    for item in generator_dim:
        key, kw, kb, kg, kbe, km, kv = jax.random.split(key, 7)
        bound = 1.0 / (dim ** 0.5)
        w = jax.random.uniform(kw, (item, dim), jnp.float32, -bound, bound)
        b = jax.random.uniform(kb, (item,), jnp.float32, -bound, bound)
        gamma = jax.random.uniform(kg, (item,), jnp.float32, 0.5, 1.5)
        beta = 0.1 * jax.random.normal(kbe, (item,), jnp.float32)
        mean = 0.1 * jax.random.normal(km, (item,), jnp.float32)
        var = jax.random.uniform(kv, (item,), jnp.float32, 0.5, 1.5)
        res_params.append((w, b, gamma, beta, mean, var))
        dim += item
    key, kw, kb = jax.random.split(key, 3)
    bound = 1.0 / (dim ** 0.5)
    w = jax.random.uniform(kw, (data_dim, dim), jnp.float32, -bound, bound)
    b = jax.random.uniform(kb, (data_dim,), jnp.float32, -bound, bound)
    return res_params, (w, b)


def reference_forward(input_, res_params, final_params, eps=1e-5):
    """Pure-JAX f32 reference matching the PyTorch module in eval mode."""
    x = input_.astype(jnp.float32)
    for (w, b, gamma, beta, mean, var) in res_params:
        z = x @ w.T + b
        z = (z - mean) / jnp.sqrt(var + eps) * gamma + beta
        h = jnp.maximum(z, 0.0)
        x = jnp.concatenate([h, x], axis=1)
    w, b = final_params
    return x @ w.T + b


if __name__ == "__main__":
    # Small shapes consistent with the module: embedding_dim=32, two residual
    # blocks of 32, data_dim=24, batch=16.
    embedding_dim = 32
    generator_dim = (32, 32)
    data_dim = 24
    batch = 16

    key = jax.random.PRNGKey(0)
    key, kx = jax.random.split(key)
    x = jax.random.normal(kx, (batch, embedding_dim), jnp.float32)

    res_params, final_params = init_params(key, embedding_dim, generator_dim,
                                           data_dim)

    # Parameter re-layout (pad / transpose / BN fold / bf16 cast) is done once,
    # outside the forward path.
    packed = prepare_params(res_params, final_params, embedding_dim)

    out = generator_forward(x, packed)
    out = jax.block_until_ready(out)

    ref = reference_forward(x, res_params, final_params)
    assert out.shape == (batch, data_dim), out.shape
    # bf16 matmul inputs / bf16 activations with f32 accumulation -> loosened
    # tolerance vs the pure-f32 reference.
    assert jnp.allclose(out, ref, atol=4e-2, rtol=4e-2), float(
        jnp.max(jnp.abs(out - ref)))

    print("KERNEL_OK")
</pallas_src>

<mosaic_0001>
module attributes {stable_mosaic.version = 11 : i64} {
  func.func @_generator_kernel(%arg0: i32, %arg1: memref<16x128xbf16, #tpu.memory_space<vmem>>, %arg2: memref<128x128xbf16, #tpu.memory_space<vmem>>, %arg3: memref<1x128xf32, #tpu.memory_space<vmem>>, %arg4: memref<256x128xbf16, #tpu.memory_space<vmem>>, %arg5: memref<1x128xf32, #tpu.memory_space<vmem>>, %arg6: memref<384x128xbf16, #tpu.memory_space<vmem>>, %arg7: memref<1x128xf32, #tpu.memory_space<vmem>>, %arg8: memref<16x128xf32, #tpu.memory_space<vmem>>, %arg9: memref<16x384xbf16, #tpu.memory_space<vmem>>) attributes {dimension_semantics = [#tpu.dimension_semantics<parallel>], iteration_bounds = array<i64: 1>, scalar_prefetch = 0 : i64, scratch_operands = 1 : i64, tpu.core_type = #tpu.core_type<tc>, window_params = [{transform_indices = @transform_0, window_bounds = array<i64: 16, 128>}, {pipeline_mode = #tpu.pipeline_mode<synchronous>, transform_indices = @transform_1, window_bounds = array<i64: 128, 128>}, {pipeline_mode = #tpu.pipeline_mode<synchronous>, transform_indices = @transform_2, window_bounds = array<i64: 1, 128>}, {pipeline_mode = #tpu.pipeline_mode<synchronous>, transform_indices = @transform_3, window_bounds = array<i64: 256, 128>}, {pipeline_mode = #tpu.pipeline_mode<synchronous>, transform_indices = @transform_4, window_bounds = array<i64: 1, 128>}, {pipeline_mode = #tpu.pipeline_mode<synchronous>, transform_indices = @transform_5, window_bounds = array<i64: 384, 128>}, {pipeline_mode = #tpu.pipeline_mode<synchronous>, transform_indices = @transform_6, window_bounds = array<i64: 1, 128>}, {transform_indices = @transform_7, window_bounds = array<i64: 16, 128>}]} {
    %c0 = arith.constant 0 : index
    %c0_0 = arith.constant 0 : index
    %0 = vector.load %arg1[%c0, %c0_0] : memref<16x128xbf16, #tpu.memory_space<vmem>>, vector<16x128xbf16>
    %c0_1 = arith.constant 0 : index
    %c256 = arith.constant 256 : index
    %1 = vector.load %arg9[%c0_1, %c256] : memref<16x384xbf16, #tpu.memory_space<vmem>>, vector<16x128xbf16>
    tpu.vector_store %arg9[%c0_1, %c256], %0 {strides = array<i32>} : memref<16x384xbf16, #tpu.memory_space<vmem>>, vector<16x128xbf16>,
    %c0_2 = arith.constant 0 : index
    %c0_3 = arith.constant 0 : index
    %2 = vector.load %arg2[%c0_2, %c0_3] : memref<128x128xbf16, #tpu.memory_space<vmem>>, vector<128x128xbf16>
    %c0_4 = arith.constant 0 : index
    %c0_5 = arith.constant 0 : index
    %3 = vector.load %arg3[%c0_4, %c0_5] : memref<1x128xf32, #tpu.memory_space<vmem>>, vector<1x128xf32>
    %c0_6 = arith.constant 0 : index
    %c256_7 = arith.constant 256 : index
    %4 = vector.load %arg9[%c0_6, %c256_7] : memref<16x384xbf16, #tpu.memory_space<vmem>>, vector<16x128xbf16>
    %cst = arith.constant dense<0.000000e+00> : vector<16x128xf32>
    %5 = tpu.matmul %4, %2, %cst {dimension_numbers = #tpu.dot_dimension_numbers<[1], [0], [0], [1], [0, 0, 1, 1], [], []>} : vector<16x128xbf16>, vector<128x128xbf16>, vector<16x128xf32> -> vector<16x128xf32>
    %6 = vector.broadcast %3 : vector<1x128xf32> to vector<16x128xf32>
    %7 = arith.addf %5, %6 : vector<16x128xf32>
    %cst_8 = arith.constant 0.000000e+00 : f32
    %8 = vector.broadcast %cst_8 : f32 to vector<16x128xf32>
    %9 = arith.maximumf %7, %8 : vector<16x128xf32>
    %10 = arith.truncf %9 : vector<16x128xf32> to vector<16x128xbf16>
    %c0_9 = arith.constant 0 : index
    %c128 = arith.constant 128 : index
    %11 = vector.load %arg9[%c0_9, %c128] : memref<16x384xbf16, #tpu.memory_space<vmem>>, vector<16x128xbf16>
    tpu.vector_store %arg9[%c0_9, %c128], %10 {strides = array<i32>} : memref<16x384xbf16, #tpu.memory_space<vmem>>, vector<16x128xbf16>,
    %c0_10 = arith.constant 0 : index
    %c0_11 = arith.constant 0 : index
    %12 = vector.load %arg4[%c0_10, %c0_11] : memref<256x128xbf16, #tpu.memory_space<vmem>>, vector<256x128xbf16>
    %c0_12 = arith.constant 0 : index
    %c0_13 = arith.constant 0 : index
    %13 = vector.load %arg5[%c0_12, %c0_13] : memref<1x128xf32, #tpu.memory_space<vmem>>, vector<1x128xf32>
    %c0_14 = arith.constant 0 : index
    %c128_15 = arith.constant 128 : index
    %14 = vector.load %arg9[%c0_14, %c128_15] : memref<16x384xbf16, #tpu.memory_space<vmem>>, vector<16x256xbf16>
    %cst_16 = arith.constant dense<0.000000e+00> : vector<16x128xf32>
    %15 = tpu.matmul %14, %12, %cst_16 {dimension_numbers = #tpu.dot_dimension_numbers<[1], [0], [0], [1], [0, 0, 1, 1], [], []>} : vector<16x256xbf16>, vector<256x128xbf16>, vector<16x128xf32> -> vector<16x128xf32>
    %16 = vector.broadcast %13 : vector<1x128xf32> to vector<16x128xf32>
    %17 = arith.addf %15, %16 : vector<16x128xf32>
    %cst_17 = arith.constant 0.000000e+00 : f32
    %18 = vector.broadcast %cst_17 : f32 to vector<16x128xf32>
    %19 = arith.maximumf %17, %18 : vector<16x128xf32>
    %20 = arith.truncf %19 : vector<16x128xf32> to vector<16x128xbf16>
    %c0_18 = arith.constant 0 : index
    %c0_19 = arith.constant 0 : index
    %21 = vector.load %arg9[%c0_18, %c0_19] : memref<16x384xbf16, #tpu.memory_space<vmem>>, vector<16x128xbf16>
    tpu.vector_store %arg9[%c0_18, %c0_19], %20 {strides = array<i32>} : memref<16x384xbf16, #tpu.memory_space<vmem>>, vector<16x128xbf16>,
    %c0_20 = arith.constant 0 : index
    %c0_21 = arith.constant 0 : index
    %22 = vector.load %arg6[%c0_20, %c0_21] : memref<384x128xbf16, #tpu.memory_space<vmem>>, vector<384x128xbf16>
    %c0_22 = arith.constant 0 : index
    %c0_23 = arith.constant 0 : index
    %23 = vector.load %arg7[%c0_22, %c0_23] : memref<1x128xf32, #tpu.memory_space<vmem>>, vector<1x128xf32>
    %c0_24 = arith.constant 0 : index
    %c0_25 = arith.constant 0 : index
    %24 = vector.load %arg9[%c0_24, %c0_25] : memref<16x384xbf16, #tpu.memory_space<vmem>>, vector<16x384xbf16>
    %cst_26 = arith.constant dense<0.000000e+00> : vector<16x128xf32>
    %25 = tpu.matmul %24, %22, %cst_26 {dimension_numbers = #tpu.dot_dimension_numbers<[1], [0], [0], [1], [0, 0, 1, 1], [], []>} : vector<16x384xbf16>, vector<384x128xbf16>, vector<16x128xf32> -> vector<16x128xf32>
    %26 = vector.broadcast %23 : vector<1x128xf32> to vector<16x128xf32>
    %27 = arith.addf %25, %26 : vector<16x128xf32>
    %c0_27 = arith.constant 0 : index
    %c0_28 = arith.constant 0 : index
    %28 = vector.load %arg8[%c0_27, %c0_28] : memref<16x128xf32, #tpu.memory_space<vmem>>, vector<16x128xf32>
    tpu.vector_store %arg8[%c0_27, %c0_28], %27 {strides = array<i32>} : memref<16x128xf32, #tpu.memory_space<vmem>>, vector<16x128xf32>,
    return
  }
  func.func @transform_0(%arg0: i32) -> (i32, i32) {
    %c0_i32 = arith.constant 0 : i32
    %c0_i32_0 = arith.constant 0 : i32
    return %arg0, %c0_i32 : i32, i32
  }
  func.func @transform_1(%arg0: i32) -> (i32, i32) {
    %c0_i32 = arith.constant 0 : i32
    %c0_i32_0 = arith.constant 0 : i32
    %c0_i32_1 = arith.constant 0 : i32
    return %c0_i32, %c0_i32_0 : i32, i32
  }
  func.func @transform_2(%arg0: i32) -> (i32, i32) {
    %c0_i32 = arith.constant 0 : i32
    %c0_i32_0 = arith.constant 0 : i32
    %c0_i32_1 = arith.constant 0 : i32
    return %c0_i32, %c0_i32_0 : i32, i32
  }
  func.func @transform_3(%arg0: i32) -> (i32, i32) {
    %c0_i32 = arith.constant 0 : i32
    %c0_i32_0 = arith.constant 0 : i32
    %c0_i32_1 = arith.constant 0 : i32
    return %c0_i32, %c0_i32_0 : i32, i32
  }
  func.func @transform_4(%arg0: i32) -> (i32, i32) {
    %c0_i32 = arith.constant 0 : i32
    %c0_i32_0 = arith.constant 0 : i32
    %c0_i32_1 = arith.constant 0 : i32
    return %c0_i32, %c0_i32_0 : i32, i32
  }
  func.func @transform_5(%arg0: i32) -> (i32, i32) {
    %c0_i32 = arith.constant 0 : i32
    %c0_i32_0 = arith.constant 0 : i32
    %c0_i32_1 = arith.constant 0 : i32
    return %c0_i32, %c0_i32_0 : i32, i32
  }
  func.func @transform_6(%arg0: i32) -> (i32, i32) {
    %c0_i32 = arith.constant 0 : i32
    %c0_i32_0 = arith.constant 0 : i32
    %c0_i32_1 = arith.constant 0 : i32
    return %c0_i32, %c0_i32_0 : i32, i32
  }
  func.func @transform_7(%arg0: i32) -> (i32, i32) {
    %c0_i32 = arith.constant 0 : i32
    %c0_i32_0 = arith.constant 0 : i32
    return %arg0, %c0_i32 : i32, i32
  }
}

module attributes {stable_mosaic.version = 11 : i64} {
  func.func @_generator_kernel(%arg0: i32, %arg1: memref<16x128xbf16, #tpu.memory_space<vmem>>, %arg2: memref<128x128xbf16, #tpu.memory_space<vmem>>, %arg3: memref<1x128xf32, #tpu.memory_space<vmem>>, %arg4: memref<256x128xbf16, #tpu.memory_space<vmem>>, %arg5: memref<1x128xf32, #tpu.memory_space<vmem>>, %arg6: memref<384x128xbf16, #tpu.memory_space<vmem>>, %arg7: memref<1x128xf32, #tpu.memory_space<vmem>>, %arg8: memref<16x128xf32, #tpu.memory_space<vmem>>, %arg9: memref<16x384xbf16, #tpu.memory_space<vmem>>) attributes {dimension_semantics = [#tpu.dimension_semantics<parallel>], iteration_bounds = array<i64: 1>, scalar_prefetch = 0 : i64, scratch_operands = 1 : i64, tpu.core_type = #tpu.core_type<tc>, window_params = [{transform_indices = @transform_0, window_bounds = array<i64: 16, 128>}, {pipeline_mode = #tpu.pipeline_mode<synchronous>, transform_indices = @transform_1, window_bounds = array<i64: 128, 128>}, {pipeline_mode = #tpu.pipeline_mode<synchronous>, transform_indices = @transform_2, window_bounds = array<i64: 1, 128>}, {pipeline_mode = #tpu.pipeline_mode<synchronous>, transform_indices = @transform_3, window_bounds = array<i64: 256, 128>}, {pipeline_mode = #tpu.pipeline_mode<synchronous>, transform_indices = @transform_4, window_bounds = array<i64: 1, 128>}, {pipeline_mode = #tpu.pipeline_mode<synchronous>, transform_indices = @transform_5, window_bounds = array<i64: 384, 128>}, {pipeline_mode = #tpu.pipeline_mode<synchronous>, transform_indices = @transform_6, window_bounds = array<i64: 1, 128>}, {transform_indices = @transform_7, window_bounds = array<i64: 16, 128>}]} {
    %c0 = arith.constant 0 : index
    %c0_0 = arith.constant 0 : index
    %0 = vector.load %arg1[%c0, %c0_0] : memref<16x128xbf16, #tpu.memory_space<vmem>>, vector<16x128xbf16>
    %c0_1 = arith.constant 0 : index
    %c256 = arith.constant 256 : index
    %1 = vector.load %arg9[%c0_1, %c256] : memref<16x384xbf16, #tpu.memory_space<vmem>>, vector<16x128xbf16>
    tpu.vector_store %arg9[%c0_1, %c256], %0 {strides = array<i32>} : memref<16x384xbf16, #tpu.memory_space<vmem>>, vector<16x128xbf16>,
    %c0_2 = arith.constant 0 : index
    %c0_3 = arith.constant 0 : index
    %2 = vector.load %arg2[%c0_2, %c0_3] : memref<128x128xbf16, #tpu.memory_space<vmem>>, vector<128x128xbf16>
    %c0_4 = arith.constant 0 : index
    %c0_5 = arith.constant 0 : index
    %3 = vector.load %arg3[%c0_4, %c0_5] : memref<1x128xf32, #tpu.memory_space<vmem>>, vector<1x128xf32>
    %c0_6 = arith.constant 0 : index
    %c256_7 = arith.constant 256 : index
    %4 = vector.load %arg9[%c0_6, %c256_7] : memref<16x384xbf16, #tpu.memory_space<vmem>>, vector<16x128xbf16>
    %cst = arith.constant dense<0.000000e+00> : vector<16x128xf32>
    %5 = tpu.matmul %4, %2, %cst {dimension_numbers = #tpu.dot_dimension_numbers<[1], [0], [0], [1], [0, 0, 1, 1], [], []>} : vector<16x128xbf16>, vector<128x128xbf16>, vector<16x128xf32> -> vector<16x128xf32>
    %6 = vector.broadcast %3 : vector<1x128xf32> to vector<16x128xf32>
    %7 = arith.addf %5, %6 : vector<16x128xf32>
    %cst_8 = arith.constant 0.000000e+00 : f32
    %8 = vector.broadcast %cst_8 : f32 to vector<16x128xf32>
    %9 = arith.maximumf %7, %8 : vector<16x128xf32>
    %10 = arith.truncf %9 : vector<16x128xf32> to vector<16x128xbf16>
    %c0_9 = arith.constant 0 : index
    %c128 = arith.constant 128 : index
    %11 = vector.load %arg9[%c0_9, %c128] : memref<16x384xbf16, #tpu.memory_space<vmem>>, vector<16x128xbf16>
    tpu.vector_store %arg9[%c0_9, %c128], %10 {strides = array<i32>} : memref<16x384xbf16, #tpu.memory_space<vmem>>, vector<16x128xbf16>,
    %c0_10 = arith.constant 0 : index
    %c0_11 = arith.constant 0 : index
    %12 = vector.load %arg4[%c0_10, %c0_11] : memref<256x128xbf16, #tpu.memory_space<vmem>>, vector<256x128xbf16>
    %c0_12 = arith.constant 0 : index
    %c0_13 = arith.constant 0 : index
    %13 = vector.load %arg5[%c0_12, %c0_13] : memref<1x128xf32, #tpu.memory_space<vmem>>, vector<1x128xf32>
    %c0_14 = arith.constant 0 : index
    %c128_15 = arith.constant 128 : index
    %14 = vector.load %arg9[%c0_14, %c128_15] : memref<16x384xbf16, #tpu.memory_space<vmem>>, vector<16x256xbf16>
    %cst_16 = arith.constant dense<0.000000e+00> : vector<16x128xf32>
    %15 = tpu.matmul %14, %12, %cst_16 {dimension_numbers = #tpu.dot_dimension_numbers<[1], [0], [0], [1], [0, 0, 1, 1], [], []>} : vector<16x256xbf16>, vector<256x128xbf16>, vector<16x128xf32> -> vector<16x128xf32>
    %16 = vector.broadcast %13 : vector<1x128xf32> to vector<16x128xf32>
    %17 = arith.addf %15, %16 : vector<16x128xf32>
    %cst_17 = arith.constant 0.000000e+00 : f32
    %18 = vector.broadcast %cst_17 : f32 to vector<16x128xf32>
    %19 = arith.maximumf %17, %18 : vector<16x128xf32>
    %20 = arith.truncf %19 : vector<16x128xf32> to vector<16x128xbf16>
    %c0_18 = arith.constant 0 : index
    %c0_19 = arith.constant 0 : index
    %21 = vector.load %arg9[%c0_18, %c0_19] : memref<16x384xbf16, #tpu.memory_space<vmem>>, vector<16x128xbf16>
    tpu.vector_store %arg9[%c0_18, %c0_19], %20 {strides = array<i32>} : memref<16x384xbf16, #tpu.memory_space<vmem>>, vector<16x128xbf16>,
    %c0_20 = arith.constant 0 : index
    %c0_21 = arith.constant 0 : index
    %22 = vector.load %arg6[%c0_20, %c0_21] : memref<384x128xbf16, #tpu.memory_space<vmem>>, vector<384x128xbf16>
    %c0_22 = arith.constant 0 : index
    %c0_23 = arith.constant 0 : index
    %23 = vector.load %arg7[%c0_22, %c0_23] : memref<1x128xf32, #tpu.memory_space<vmem>>, vector<1x128xf32>
    %c0_24 = arith.constant 0 : index
    %c0_25 = arith.constant 0 : index
    %24 = vector.load %arg9[%c0_24, %c0_25] : memref<16x384xbf16, #tpu.memory_space<vmem>>, vector<16x384xbf16>
    %cst_26 = arith.constant dense<0.000000e+00> : vector<16x128xf32>
    %25 = tpu.matmul %24, %22, %cst_26 {dimension_numbers = #tpu.dot_dimension_numbers<[1], [0], [0], [1], [0, 0, 1, 1], [], []>} : vector<16x384xbf16>, vector<384x128xbf16>, vector<16x128xf32> -> vector<16x128xf32>
    %26 = vector.broadcast %23 : vector<1x128xf32> to vector<16x128xf32>
    %27 = arith.addf %25, %26 : vector<16x128xf32>
    %c0_27 = arith.constant 0 : index
    %c0_28 = arith.constant 0 : index
    %28 = vector.load %arg8[%c0_27, %c0_28] : memref<16x128xf32, #tpu.memory_space<vmem>>, vector<16x128xf32>
    tpu.vector_store %arg8[%c0_27, %c0_28], %27 {strides = array<i32>} : memref<16x128xf32, #tpu.memory_space<vmem>>, vector<16x128xf32>,
    return
  }
  func.func @transform_0(%arg0: i32) -> (i32, i32) {
    %c0_i32 = arith.constant 0 : i32
    %c0_i32_0 = arith.constant 0 : i32
    return %arg0, %c0_i32 : i32, i32
  }
  func.func @transform_1(%arg0: i32) -> (i32, i32) {
    %c0_i32 = arith.constant 0 : i32
    %c0_i32_0 = arith.constant 0 : i32
    %c0_i32_1 = arith.constant 0 : i32
    return %c0_i32, %c0_i32_0 : i32, i32
  }
  func.func @transform_2(%arg0: i32) -> (i32, i32) {
    %c0_i32 = arith.constant 0 : i32
    %c0_i32_0 = arith.constant 0 : i32
    %c0_i32_1 = arith.constant 0 : i32
    return %c0_i32, %c0_i32_0 : i32, i32
  }
  func.func @transform_3(%arg0: i32) -> (i32, i32) {
    %c0_i32 = arith.constant 0 : i32
    %c0_i32_0 = arith.constant 0 : i32
    %c0_i32_1 = arith.constant 0 : i32
    return %c0_i32, %c0_i32_0 : i32, i32
  }
  func.func @transform_4(%arg0: i32) -> (i32, i32) {
    %c0_i32 = arith.constant 0 : i32
    %c0_i32_0 = arith.constant 0 : i32
    %c0_i32_1 = arith.constant 0 : i32
    return %c0_i32, %c0_i32_0 : i32, i32
  }
  func.func @transform_5(%arg0: i32) -> (i32, i32) {
    %c0_i32 = arith.constant 0 : i32
    %c0_i32_0 = arith.constant 0 : i32
    %c0_i32_1 = arith.constant 0 : i32
    return %c0_i32, %c0_i32_0 : i32, i32
  }
  func.func @transform_6(%arg0: i32) -> (i32, i32) {
    %c0_i32 = arith.constant 0 : i32
    %c0_i32_0 = arith.constant 0 : i32
    %c0_i32_1 = arith.constant 0 : i32
    return %c0_i32, %c0_i32_0 : i32, i32
  }
  func.func @transform_7(%arg0: i32) -> (i32, i32) {
    %c0_i32 = arith.constant 0 : i32
    %c0_i32_0 = arith.constant 0 : i32
    return %arg0, %c0_i32 : i32, i32
  }
}

</mosaic_0001>

<bundles_post_ra>
// kernel: tpu_custom_call.1
= control target key start
LH: loop header
LB: loop body
LE: loop exit
PB: predicated region body
PF: predicated region fallthrough
CT: control target
= control target key end

     0   :  { %12 = vsyncpa [#allocation4], 0  ;;  %s1132_s0 = inlined_call_operand.hbm [shape: bf16[16,128], index: 0, kind: input, shape index: {}]   ;;  %s1133_s1 = inlined_call_operand.hbm [shape: bf16[128,128], index: 1, kind: input, shape index: {}]   ;;  %s1134_s2 = inlined_call_operand.vmem [shape: f32[1,128], index: 2, kind: input, shape index: {}]   ;;  %s1135_s3 = inlined_call_operand.hbm [shape: bf16[256,128], index: 3, kind: input, shape index: {}]   ;;  %s1136_s4 = inlined_call_operand.vmem [shape: f32[1,128], index: 4, kind: input, shape index: {}]   ;;  %s1137_s5 = inlined_call_operand.hbm [shape: bf16[384,128], index: 5, kind: input, shape index: {}]   ;;  %s1138_s6 = inlined_call_operand.vmem [shape: f32[1,128], index: 6, kind: input, shape index: {}]   ;;  %s1139_s7 = inlined_call_operand.hbm [shape: f32[16,128], index: 7, kind: output, shape index: {}]  }
   0x1   :  { %13 = vsyncpa [#allocation7], 0 }
   0x2   :  { %14 = vsyncpa [#allocation10], 0 }
   0x3   :  { %15 = vsyncpa [#allocation5], 0  ;;  %s33_s26 = sshll.u32 %s1133_s1, 4  ;;  %s1059_s27 = smov [#allocation6]   ;;  %s34_s26 = int_to_ptr.hbm [resolvable:$true] %s33_s26 }
   0x4   :  { %s35_s28 = sshll.u32 %s1059_s27, 4  ;;  %s20_s8 = sshll.u32 %s1132_s0, 4  ;;  %s36_s28 = int_to_ptr.vmem [resolvable:$true] %s35_s28  ;;  %s21_s8 = int_to_ptr.hbm [resolvable:$true] %s20_s8 }
   0x5   :  { %s1060_s9 = smov 64   ;;  %s1061_s10 = smov 4  }
   0x6   :  { %41 = dma.hbm_to_vmem [thread:$0]  %s34_s26, 1024, %s36_s28, [#allocation7], %s1060_s9, %s1060_s9, %s1061_s10  }
   0x7   :  { %s1062_s11 = smov [#allocation3]   ;;  %s48_s15 = sshll.u32 %s1135_s3, 4  ;;  %s49_s15 = int_to_ptr.hbm [resolvable:$true] %s48_s15 }
   0x8   :  { %s22_s12 = sshll.u32 %s1062_s11, 4  ;;  %s63_s17 = sshll.u32 %s1137_s5, 4  ;;  %s23_s12 = int_to_ptr.vmem [resolvable:$true] %s22_s12  ;;  %s64_s17 = int_to_ptr.hbm [resolvable:$true] %s63_s17 }
   0x9   :  { %28 = dma.hbm_to_vmem [thread:$0]  %s21_s8, 128, %s23_s12, [#allocation4], %s1060_s9, %s1060_s9, %s1061_s10  }
   0xa   :  { %s1063_s18 = smov [#allocation8]   ;;  %s1064_s0 = smov [#allocation9]  }
   0xb   :  { %s50_s19 = sshll.u32 %s1063_s18, 4  ;;  %s65_s20 = sshll.u32 %s1064_s0, 4  ;;  %s51_s19 = int_to_ptr.vmem [resolvable:$true] %s50_s19  ;;  %s66_s20 = int_to_ptr.vmem [resolvable:$true] %s65_s20 }
   0xc   :  { %56 = dma.hbm_to_vmem [thread:$0]  %s49_s15, 2048, %s51_s19, [#allocation7], %s1060_s9, %s1060_s9, %s1061_s10  }
   0xd   :  { %71 = dma.hbm_to_vmem [thread:$0]  %s64_s17, 3072, %s66_s20, [#allocation10], %s1060_s9, %s1060_s9, %s1061_s10  }
   0xe   :  { %1051 = dma.done.wait [#allocation4], 128  }
   0xf   :  { %1052 = vsyncadd [#allocation4], 4294967168 }
  0x10   :  { %1053 = dma.done.wait [#allocation7], 3072  }
  0x11   :  { %1054 = vsyncadd [#allocation7], 4294964224 }
  0x12   :  { %1055 = dma.done.wait [#allocation10], 3072  }
  0x13   :  { %1056 = vsyncadd [#allocation10], 4294964224  ;;  %v872_v0 = vld [vmem:[#allocation6 + $0x38] sm:$0xff]  ;;  %v871_v1 = vld [vmem:[#allocation6 + $0x30] sm:$0xff]  ;;  %s1065_s23 = smov [#allocation11]   ;;  %s634_s27 = sshll.u32 %s1139_s7, 4  ;;  %s635_s27 = int_to_ptr.hbm [resolvable:$true] %s634_s27 }
  0x14   :  { %170 = vmatpush.bf16.msra.mxu0 %v872_v0  ;;  %v90_v2 = vld [vmem:[#allocation3] sm:$0xf]  ;;  %v91_v3 = vld [vmem:[#allocation3 + $0x4] sm:$0xf]  ;;  %v888_v6 = vld [vmem:[#allocation8 + $0x70] sm:$0xff]  ;;  %s632_s24 = sshll.u32 %s1065_s23, 4  ;;  %s633_s24 = int_to_ptr.vmem [resolvable:$true] %s632_s24 }
  0x15   :  { %92 = vst [vmem:[#allocation2 + $0x8] sm:$0xf] %v90_v2  ;;  %v889_v4 = vld [vmem:[#allocation8 + $0x78] sm:$0xff]  ;;  %v870_v7 = vld [vmem:[#allocation6 + $0x28] sm:$0xff]  ;;  %v880_v8 = vld [vmem:[#allocation8 + $0x30] sm:$0xff]  ;;  %s1067_s28 = smov 8  }
  0x16   :  { %93 = vst [vmem:[#allocation2 + $0x14] sm:$0xf] %v91_v3  ;;  %v881_v5 = vld [vmem:[#allocation8 + $0x38] sm:$0xff]  ;;  %348 = vmatpush.bf16.msra.mxu2 %v889_v4  ;;  %v887_v9 = vld [vmem:[#allocation8 + $0x68] sm:$0xff]  ;;  %v869_v10 = vld [vmem:[#allocation6 + $0x20] sm:$0xff] }
  0x17   :  { %334 = vmatpush.bf16.msra.mxu1 %v881_v5  ;;  %v886_v11 = vld [vmem:[#allocation8 + $0x60] sm:$0xff]  ;;  %v868_v12 = vld [vmem:[#allocation6 + $0x18] sm:$0xff]  ;;  %v867_v14 = vld [vmem:[#allocation6 + $0x10] sm:$0xff] }
  0x18   :  { %171 = vmatpush.bf16.msra.mxu0 %v871_v1  ;;  %v885_v13 = vld [vmem:[#allocation8 + $0x58] sm:$0xff]  ;;  %v866_v15 = vld [vmem:[#allocation6 + $0x8] sm:$0xff]  ;;  %v865_v16 = vld [vmem:[#allocation6] sm:$0xff] }
  0x19   :  { %v907_v19 = vld [vmem:[#allocation9 + $0x78] sm:$0xff]  ;;  %v906_v21 = vld [vmem:[#allocation9 + $0x70] sm:$0xff]  ;;  %v879_v22 = vld [vmem:[#allocation8 + $0x28] sm:$0xff] }
  0x1a   :  { %349 = vmatpush.bf16.msra.mxu2 %v888_v6  ;;  %v884_v23 = vld [vmem:[#allocation8 + $0x50] sm:$0xff]  ;;  %v905_v24 = vld [vmem:[#allocation9 + $0x68] sm:$0xff]  ;;  %v878_v25 = vld [vmem:[#allocation8 + $0x20] sm:$0xff] }
  0x1b   :  { %335 = vmatpush.bf16.msra.mxu1 %v880_v8  ;;  %v883_v26 = vld [vmem:[#allocation8 + $0x48] sm:$0xff]  ;;  %v904_v27 = vld [vmem:[#allocation9 + $0x60] sm:$0xff]  ;;  %v877_v28 = vld [vmem:[#allocation8 + $0x18] sm:$0xff] }
  0x1c   :  { %172 = vmatpush.bf16.msra.mxu0 %v870_v7  ;;  %v651_v17 = vld [vmem:[#allocation2 + $0x8] sm:$0xf]  ;;  %v882_v29 = vld [vmem:[#allocation8 + $0x40] sm:$0xff]  ;;  %v903_v30 = vld [vmem:[#allocation9 + $0x58] sm:$0xff] }
  0x1d   :  { %v873_v18 = vld [vmem:[#allocation2 + $0x10] sm:$0xf0]  ;;  %v890_v31 = vld [vmem:[#allocation2 + $0x8] sm:$0xf]  ;;  %v874_v38 = vld [vmem:[#allocation8] sm:$0xff] }
  0x1e   :  { %350 = vmatpush.bf16.msra.mxu2 %v887_v9  ;;  %v652_v20 = vor.u32 %v873_v18, %v651_v17  ;;  %v689_v32 = vld [vmem:[#allocation2 + $0x10] sm:$0xf0]  ;;  %v875_v36 = vld [vmem:[#allocation8 + $0x8] sm:$0xff]  ;;  %v900_v39 = vld [vmem:[#allocation9 + $0x40] sm:$0xff] }
  0x1f   :  { %336 = vmatpush.bf16.msra.mxu1 %v879_v22  ;;  %v692_v33 = vor.u32 %v890_v31, %v689_v32  ;;  %v876_v34 = vld [vmem:[#allocation8 + $0x10] sm:$0xff]  ;;  %v901_v37 = vld [vmem:[#allocation9 + $0x48] sm:$0xff]  ;;  %v928_v40 = vld [vmem:[%s1134_s2] ss:$0 sm:$0xff] }
  0x20   :  { %173 = vmatpush.bf16.msra.mxu0 %v869_v10  ;;  %v902_v35 = vld [vmem:[#allocation9 + $0x50] sm:$0xff]  ;;  %v899_v55 = vld [vmem:[#allocation9 + $0x38] sm:$0xff]  ;;  %v897_v59 = vld [vmem:[#allocation9 + $0x28] sm:$0xff] }
  0x21   :  { %v915_v56 = vld [vmem:[#allocation9 + $0xb8] sm:$0xff]  ;;  %584 = vmatpush.bf16.msra.mxu3 %v899_v55  ;;  %v898_v57 = vld [vmem:[#allocation9 + $0x30] sm:$0xff]  ;;  %v913_v60 = vld [vmem:[#allocation9 + $0xa8] sm:$0xff] }
  0x22   :  { %351 = vmatpush.bf16.msra.mxu2 %v886_v11  ;;  %v914_v58 = vld [vmem:[#allocation9 + $0xb0] sm:$0xff]  ;;  %v896_v61 = vld [vmem:[#allocation9 + $0x20] sm:$0xff]  ;;  %v895_v63 = vld [vmem:[#allocation9 + $0x18] sm:$0xff] }
  0x23   :  { %337 = vmatpush.bf16.msra.mxu1 %v878_v25  ;;  %v912_v62 = vld [vmem:[#allocation9 + $0xa0] sm:$0xff]  ;;  %v911_v0 = vld [vmem:[#allocation9 + $0x98] sm:$0xff]  ;;  %v894_v1 = vld [vmem:[#allocation9 + $0x10] sm:$0xff] }
  0x24   :  { %174 = vmatpush.bf16.msra.mxu0 %v868_v12  ;;  %v910_v2 = vld [vmem:[#allocation9 + $0x90] sm:$0xff]  ;;  %v893_v3 = vld [vmem:[#allocation9 + $0x8] sm:$0xff]  ;;  %v892_v5 = vld [vmem:[#allocation9] sm:$0xff] }
  0x25   :  { %585 = vmatpush.bf16.msra.mxu3 %v898_v57  ;;  %v909_v4 = vld [vmem:[#allocation9 + $0x88] sm:$0xff]  ;;  %v908_v6 = vld [vmem:[#allocation9 + $0x80] sm:$0xff]  ;;  %v918_v8 = vld [vmem:[#allocation2 + $0x10] sm:$0xf0] }
  0x26   :  { %352 = vmatpush.bf16.msra.mxu2 %v885_v13  ;;  %v767_v7 = vld [vmem:[#allocation2 + $0x8] sm:$0xf]  ;;  %v929_v10 = vld [vmem:[%s1136_s4] ss:$0 sm:$0xff] }
  0x27   :  { %338 = vmatpush.bf16.msra.mxu1 %v877_v28  ;;  %v768_v9 = vor.u32 %v918_v8, %v767_v7 }
  0x28   :  { %175 = vmatpush.bf16.msra.mxu0 %v867_v14 }
  0x29   :  { %586 = vmatpush.bf16.msra.mxu3 %v897_v59 }
  0x2a   :  { %353 = vmatpush.bf16.msra.mxu2 %v884_v23 }
  0x2b   :  { %339 = vmatpush.bf16.msra.mxu1 %v876_v34 }
  0x2c   :  { %176 = vmatpush.bf16.msra.mxu0 %v866_v15 }
  0x2d   :  { %587 = vmatpush.bf16.msra.mxu3 %v896_v61 }
  0x2e   :  { %354 = vmatpush.bf16.msra.mxu2 %v883_v26  ;;  %v930_v26 = vld [vmem:[%s1138_s6] ss:$0 sm:$0xff]  ;;  %s1066_s6 = smov 128  }
  0x2f   :  { %340 = vmatpush.bf16.msra.mxu1 %v875_v36 }
  0x30   :  { %177 = vmatpush.bf16.msra.mxu0 %v865_v16 }
  0x31   :  { %588 = vmatpush.bf16.msra.mxu3 %v895_v63 }
  0x32   :  { %355 = vmatpush.bf16.msra.mxu2 %v882_v29 }
  0x33   :  { %178 = vmatmul.bf16.vlgmr.msra.gmra.mxu0 %v652_v20  ;;  %341 = vmatpush.bf16.msra.mxu1 %v874_v38 }
  0x34   :  { %598 = vmatpush.bf16.msrb.mxu0 %v907_v19 }
  0x35   :  { %356 = vmatmul.bf16.vlgmr.msra.gmra.mxu2 %v692_v33  ;;  %589 = vmatpush.bf16.msra.mxu3 %v894_v1 }
  0x37   :  { %612 = vmatpush.bf16.msrb.mxu1 %v915_v56 }
  0x38   :  { %599 = vmatpush.bf16.msrb.mxu0 %v906_v21 }
  0x39   :  { %590 = vmatpush.bf16.msra.mxu3 %v893_v3 }
  0x3b   :  { %613 = vmatpush.bf16.msrb.mxu1 %v914_v58 }
  0x3c   :  { %600 = vmatpush.bf16.msrb.mxu0 %v905_v24 }
  0x3d   :  { %591 = vmatpush.bf16.msra.mxu3 %v892_v5 }
  0x3f   :  { %614 = vmatpush.bf16.msrb.mxu1 %v913_v60 }
  0x40   :  { %601 = vmatpush.bf16.msrb.mxu0 %v904_v27 }
  0x43   :  { %615 = vmatpush.bf16.msrb.mxu1 %v912_v62 }
  0x44   :  { %602 = vmatpush.bf16.msrb.mxu0 %v903_v30 }
  0x47   :  { %616 = vmatpush.bf16.msrb.mxu1 %v911_v0 }
  0x48   :  { %603 = vmatpush.bf16.msrb.mxu0 %v902_v35 }
  0x4b   :  { %617 = vmatpush.bf16.msrb.mxu1 %v910_v2 }
  0x4c   :  { %604 = vmatpush.bf16.msrb.mxu0 %v901_v37 }
  0x4f   :  { %618 = vmatpush.bf16.msrb.mxu1 %v909_v4 }
  0x50   :  { %605 = vmatpush.bf16.msrb.mxu0 %v900_v39 }
  0x53   :  { %619 = vmatpush.bf16.msrb.mxu1 %v908_v6 }
  0xb0   :  { %v179_v41 = vpop.f32.mrf.mxu0 }
  0xb1   :  { %v180_v42 = vadd.f32 %v928_v40, %v179_v41 }
  0xb3   :  { %v184_v43 = vmax.f32 %v180_v42, 0.0 }
  0xb5   :  { %v186_v44 = vpack.c.bf16 %v184_v43, %v184_v43 }
  0xb7   :  { %188 = vst [vmem:[#allocation2 + $0x4] sm:$0xf] %v186_v44 }
  0xb8   :  { %v181_v45 = vpop.f32.mrf.mxu0  ;;  %v357_v11 = vpop.f32.mrf.mxu2 }
  0xb9   :  { %v182_v46 = vadd.f32 %v928_v40, %v181_v45 }
  0xbb   :  { %v185_v47 = vmax.f32 %v182_v46, 0.0 }
  0xbd   :  { %v187_v48 = vpack.c.bf16 %v185_v47, %v185_v47 }
  0xbe   :  { %v687_v49 = vld [vmem:[#allocation2 + $0x4] sm:$0xf] }
  0xbf   :  { %189 = vst [vmem:[#allocation2 + $0x10] sm:$0xf] %v187_v48  ;;  %v916_v51 = vld [vmem:[#allocation2 + $0x4] sm:$0xf] }
  0xc0   :  { %v359_v19 = vpop.f32.mrf.mxu2 }
  0xc6   :  { %v891_v50 = vld [vmem:[#allocation2 + $0xc] sm:$0xf0] }
  0xc7   :  { %v761_v52 = vld [vmem:[#allocation2 + $0xc] sm:$0xf0]  ;;  %v688_v53 = vor.u32 %v891_v50, %v687_v49 }
  0xc8   :  { %v764_v54 = vor.u32 %v916_v51, %v761_v52 }
  0xc9   :  { %342 = vmatmul.bf16.vlgmr.msra.gmra.mxu1 %v688_v53 }
  0xca   :  { %606 = vmatmul.bf16.vlgmr.msrb.gmra.mxu0 %v764_v54 }
  0xd9   :  { %620 = vmatmul.bf16.vlgmr.msrb.gmra.mxu1 %v768_v9 }
 0x146   :  { %v343_v12 = vpop.f32.mrf.mxu1 }
 0x147   :  { %v344_v13 = vadd.f32 %v929_v10, %v343_v12  ;;  %v607_v27 = vpop.f32.mrf.mxu0 }
 0x149   :  { %v358_v14 = vadd.f32 %v357_v11, %v344_v13 }
 0x14b   :  { %v362_v15 = vmax.f32 %v358_v14, 0.0 }
 0x14d   :  { %v364_v16 = vpack.c.bf16 %v362_v15, %v362_v15 }
 0x14e   :  { %v345_v17 = vpop.f32.mrf.mxu1 }
 0x14f   :  { %366 = vst [vmem:[#allocation2] sm:$0xf] %v364_v16  ;;  %v346_v18 = vadd.f32 %v929_v10, %v345_v17  ;;  %v609_v35 = vpop.f32.mrf.mxu0 }
 0x151   :  { %v360_v20 = vadd.f32 %v359_v19, %v346_v18 }
 0x153   :  { %v363_v21 = vmax.f32 %v360_v20, 0.0 }
 0x155   :  { %v365_v22 = vpack.c.bf16 %v363_v21, %v363_v21 }
 0x156   :  { %v759_v23 = vld [vmem:[#allocation2] sm:$0xf]  ;;  %v621_v30 = vpop.f32.mrf.mxu1 }
 0x157   :  { %367 = vst [vmem:[#allocation2 + $0xc] sm:$0xf] %v365_v22 }
 0x15e   :  { %v917_v24 = vld [vmem:[#allocation2 + $0x8] sm:$0xf0]  ;;  %v623_v37 = vpop.f32.mrf.mxu1 }
 0x15f   :  { %v760_v25 = vor.u32 %v917_v24, %v759_v23 }
 0x161   :  { %592 = vmatmul.bf16.vlgmr.msra.gmra.mxu3 %v760_v25 }
 0x1e4   :  { %v593_v28 = vpop.f32.mrf.mxu3 }
 0x1e5   :  { %v594_v29 = vadd.f32 %v930_v26, %v593_v28 }
 0x1e7   :  { %v608_v31 = vadd.f32 %v607_v27, %v594_v29 }
 0x1e9   :  { %v622_v32 = vadd.f32 %v621_v30, %v608_v31 }
 0x1eb   :  { %626 = vst [vmem:[#allocation11] sm:$0xff] %v622_v32 }
 0x1ec   :  { %v595_v33 = vpop.f32.mrf.mxu3 }
 0x1ed   :  { %v596_v34 = vadd.f32 %v930_v26, %v595_v33 }
 0x1ef   :  { %v610_v36 = vadd.f32 %v609_v35, %v596_v34 }
 0x1f1   :  { %v624_v38 = vadd.f32 %v623_v37, %v610_v36 }
 0x1f3   :  { %627 = vst [vmem:[#allocation11 + $0x8] sm:$0xff] %v624_v38 }
 0x1f4   :  { %640 = dma.vmem_to_hbm [thread:$0]  %s633_s24, 256, %s635_s27, [#allocation5], %s1066_s6, %s1066_s6, %s1067_s28  }
 0x1f5   :  { %1057 = dma.done.wait [#allocation5], 256  }
 0x1f6   :  { %1058 = vsyncadd [#allocation5], 4294967040 }
 0x1f7   :  { %645 = vsyncpa [#allocation4], 1 }
 0x1f8   :  { %646 = vsyncpa [#allocation7], 1 }
 0x1f9   :  { %647 = vsyncpa [#allocation10], 1 }
 0x1fa   :  { %648 = vsyncpa [#allocation5], 1 }

// kernel: tpu_custom_call.1
= control target key start
LH: loop header
LB: loop body
LE: loop exit
PB: predicated region body
PF: predicated region fallthrough
CT: control target
= control target key end

     0   :  { %12 = vsyncpa [#allocation4], 0  ;;  %s1132_s0 = inlined_call_operand.hbm [shape: bf16[16,128], index: 0, kind: input, shape index: {}]   ;;  %s1133_s1 = inlined_call_operand.hbm [shape: bf16[128,128], index: 1, kind: input, shape index: {}]   ;;  %s1134_s2 = inlined_call_operand.vmem [shape: f32[1,128], index: 2, kind: input, shape index: {}]   ;;  %s1135_s3 = inlined_call_operand.hbm [shape: bf16[256,128], index: 3, kind: input, shape index: {}]   ;;  %s1136_s4 = inlined_call_operand.vmem [shape: f32[1,128], index: 4, kind: input, shape index: {}]   ;;  %s1137_s5 = inlined_call_operand.hbm [shape: bf16[384,128], index: 5, kind: input, shape index: {}]   ;;  %s1138_s6 = inlined_call_operand.vmem [shape: f32[1,128], index: 6, kind: input, shape index: {}]   ;;  %s1139_s7 = inlined_call_operand.hbm [shape: f32[16,128], index: 7, kind: output, shape index: {}]  }
   0x1   :  { %13 = vsyncpa [#allocation7], 0 }
   0x2   :  { %14 = vsyncpa [#allocation10], 0 }
   0x3   :  { %15 = vsyncpa [#allocation5], 0  ;;  %s33_s26 = sshll.u32 %s1133_s1, 4  ;;  %s1059_s27 = smov [#allocation6]   ;;  %s34_s26 = int_to_ptr.hbm [resolvable:$true] %s33_s26 }
   0x4   :  { %s35_s28 = sshll.u32 %s1059_s27, 4  ;;  %s20_s8 = sshll.u32 %s1132_s0, 4  ;;  %s36_s28 = int_to_ptr.vmem [resolvable:$true] %s35_s28  ;;  %s21_s8 = int_to_ptr.hbm [resolvable:$true] %s20_s8 }
   0x5   :  { %s1060_s9 = smov 64   ;;  %s1061_s10 = smov 4  }
   0x6   :  { %41 = dma.hbm_to_vmem [thread:$0]  %s34_s26, 1024, %s36_s28, [#allocation7], %s1060_s9, %s1060_s9, %s1061_s10  }
   0x7   :  { %s1062_s11 = smov [#allocation3]   ;;  %s48_s15 = sshll.u32 %s1135_s3, 4  ;;  %s49_s15 = int_to_ptr.hbm [resolvable:$true] %s48_s15 }
   0x8   :  { %s22_s12 = sshll.u32 %s1062_s11, 4  ;;  %s63_s17 = sshll.u32 %s1137_s5, 4  ;;  %s23_s12 = int_to_ptr.vmem [resolvable:$true] %s22_s12  ;;  %s64_s17 = int_to_ptr.hbm [resolvable:$true] %s63_s17 }
   0x9   :  { %28 = dma.hbm_to_vmem [thread:$0]  %s21_s8, 128, %s23_s12, [#allocation4], %s1060_s9, %s1060_s9, %s1061_s10  }
   0xa   :  { %s1063_s18 = smov [#allocation8]   ;;  %s1064_s0 = smov [#allocation9]  }
   0xb   :  { %s50_s19 = sshll.u32 %s1063_s18, 4  ;;  %s65_s20 = sshll.u32 %s1064_s0, 4  ;;  %s51_s19 = int_to_ptr.vmem [resolvable:$true] %s50_s19  ;;  %s66_s20 = int_to_ptr.vmem [resolvable:$true] %s65_s20 }
   0xc   :  { %56 = dma.hbm_to_vmem [thread:$0]  %s49_s15, 2048, %s51_s19, [#allocation7], %s1060_s9, %s1060_s9, %s1061_s10  }
   0xd   :  { %71 = dma.hbm_to_vmem [thread:$0]  %s64_s17, 3072, %s66_s20, [#allocation10], %s1060_s9, %s1060_s9, %s1061_s10  }
   0xe   :  { %1051 = dma.done.wait [#allocation4], 128  }
   0xf   :  { %1052 = vsyncadd [#allocation4], 4294967168 }
  0x10   :  { %1053 = dma.done.wait [#allocation7], 3072  }
  0x11   :  { %1054 = vsyncadd [#allocation7], 4294964224 }
  0x12   :  { %1055 = dma.done.wait [#allocation10], 3072  }
  0x13   :  { %1056 = vsyncadd [#allocation10], 4294964224  ;;  %v872_v0 = vld [vmem:[#allocation6 + $0x38] sm:$0xff]  ;;  %v871_v1 = vld [vmem:[#allocation6 + $0x30] sm:$0xff]  ;;  %s1065_s23 = smov [#allocation11]   ;;  %s634_s27 = sshll.u32 %s1139_s7, 4  ;;  %s635_s27 = int_to_ptr.hbm [resolvable:$true] %s634_s27 }
  0x14   :  { %170 = vmatpush.bf16.msra.mxu0 %v872_v0  ;;  %v90_v2 = vld [vmem:[#allocation3] sm:$0xf]  ;;  %v91_v3 = vld [vmem:[#allocation3 + $0x4] sm:$0xf]  ;;  %v888_v6 = vld [vmem:[#allocation8 + $0x70] sm:$0xff]  ;;  %s632_s24 = sshll.u32 %s1065_s23, 4  ;;  %s633_s24 = int_to_ptr.vmem [resolvable:$true] %s632_s24 }
  0x15   :  { %92 = vst [vmem:[#allocation2 + $0x8] sm:$0xf] %v90_v2  ;;  %v889_v4 = vld [vmem:[#allocation8 + $0x78] sm:$0xff]  ;;  %v870_v7 = vld [vmem:[#allocation6 + $0x28] sm:$0xff]  ;;  %v880_v8 = vld [vmem:[#allocation8 + $0x30] sm:$0xff]  ;;  %s1067_s28 = smov 8  }
  0x16   :  { %93 = vst [vmem:[#allocation2 + $0x14] sm:$0xf] %v91_v3  ;;  %v881_v5 = vld [vmem:[#allocation8 + $0x38] sm:$0xff]  ;;  %348 = vmatpush.bf16.msra.mxu2 %v889_v4  ;;  %v887_v9 = vld [vmem:[#allocation8 + $0x68] sm:$0xff]  ;;  %v869_v10 = vld [vmem:[#allocation6 + $0x20] sm:$0xff] }
  0x17   :  { %334 = vmatpush.bf16.msra.mxu1 %v881_v5  ;;  %v886_v11 = vld [vmem:[#allocation8 + $0x60] sm:$0xff]  ;;  %v868_v12 = vld [vmem:[#allocation6 + $0x18] sm:$0xff]  ;;  %v867_v14 = vld [vmem:[#allocation6 + $0x10] sm:$0xff] }
  0x18   :  { %171 = vmatpush.bf16.msra.mxu0 %v871_v1  ;;  %v885_v13 = vld [vmem:[#allocation8 + $0x58] sm:$0xff]  ;;  %v866_v15 = vld [vmem:[#allocation6 + $0x8] sm:$0xff]  ;;  %v865_v16 = vld [vmem:[#allocation6] sm:$0xff] }
  0x19   :  { %v907_v19 = vld [vmem:[#allocation9 + $0x78] sm:$0xff]  ;;  %v906_v21 = vld [vmem:[#allocation9 + $0x70] sm:$0xff]  ;;  %v879_v22 = vld [vmem:[#allocation8 + $0x28] sm:$0xff] }
  0x1a   :  { %349 = vmatpush.bf16.msra.mxu2 %v888_v6  ;;  %v884_v23 = vld [vmem:[#allocation8 + $0x50] sm:$0xff]  ;;  %v905_v24 = vld [vmem:[#allocation9 + $0x68] sm:$0xff]  ;;  %v878_v25 = vld [vmem:[#allocation8 + $0x20] sm:$0xff] }
  0x1b   :  { %335 = vmatpush.bf16.msra.mxu1 %v880_v8  ;;  %v883_v26 = vld [vmem:[#allocation8 + $0x48] sm:$0xff]  ;;  %v904_v27 = vld [vmem:[#allocation9 + $0x60] sm:$0xff]  ;;  %v877_v28 = vld [vmem:[#allocation8 + $0x18] sm:$0xff] }
  0x1c   :  { %172 = vmatpush.bf16.msra.mxu0 %v870_v7  ;;  %v651_v17 = vld [vmem:[#allocation2 + $0x8] sm:$0xf]  ;;  %v882_v29 = vld [vmem:[#allocation8 + $0x40] sm:$0xff]  ;;  %v903_v30 = vld [vmem:[#allocation9 + $0x58] sm:$0xff] }
  0x1d   :  { %v873_v18 = vld [vmem:[#allocation2 + $0x10] sm:$0xf0]  ;;  %v890_v31 = vld [vmem:[#allocation2 + $0x8] sm:$0xf]  ;;  %v874_v38 = vld [vmem:[#allocation8] sm:$0xff] }
  0x1e   :  { %350 = vmatpush.bf16.msra.mxu2 %v887_v9  ;;  %v652_v20 = vor.u32 %v873_v18, %v651_v17  ;;  %v689_v32 = vld [vmem:[#allocation2 + $0x10] sm:$0xf0]  ;;  %v875_v36 = vld [vmem:[#allocation8 + $0x8] sm:$0xff]  ;;  %v900_v39 = vld [vmem:[#allocation9 + $0x40] sm:$0xff] }
  0x1f   :  { %336 = vmatpush.bf16.msra.mxu1 %v879_v22  ;;  %v692_v33 = vor.u32 %v890_v31, %v689_v32  ;;  %v876_v34 = vld [vmem:[#allocation8 + $0x10] sm:$0xff]  ;;  %v901_v37 = vld [vmem:[#allocation9 + $0x48] sm:$0xff]  ;;  %v928_v40 = vld [vmem:[%s1134_s2] ss:$0 sm:$0xff] }
  0x20   :  { %173 = vmatpush.bf16.msra.mxu0 %v869_v10  ;;  %v902_v35 = vld [vmem:[#allocation9 + $0x50] sm:$0xff]  ;;  %v899_v55 = vld [vmem:[#allocation9 + $0x38] sm:$0xff]  ;;  %v897_v59 = vld [vmem:[#allocation9 + $0x28] sm:$0xff] }
  0x21   :  { %v915_v56 = vld [vmem:[#allocation9 + $0xb8] sm:$0xff]  ;;  %584 = vmatpush.bf16.msra.mxu3 %v899_v55  ;;  %v898_v57 = vld [vmem:[#allocation9 + $0x30] sm:$0xff]  ;;  %v913_v60 = vld [vmem:[#allocation9 + $0xa8] sm:$0xff] }
  0x22   :  { %351 = vmatpush.bf16.msra.mxu2 %v886_v11  ;;  %v914_v58 = vld [vmem:[#allocation9 + $0xb0] sm:$0xff]  ;;  %v896_v61 = vld [vmem:[#allocation9 + $0x20] sm:$0xff]  ;;  %v895_v63 = vld [vmem:[#allocation9 + $0x18] sm:$0xff] }
  0x23   :  { %337 = vmatpush.bf16.msra.mxu1 %v878_v25  ;;  %v912_v62 = vld [vmem:[#allocation9 + $0xa0] sm:$0xff]  ;;  %v911_v0 = vld [vmem:[#allocation9 + $0x98] sm:$0xff]  ;;  %v894_v1 = vld [vmem:[#allocation9 + $0x10] sm:$0xff] }
  0x24   :  { %174 = vmatpush.bf16.msra.mxu0 %v868_v12  ;;  %v910_v2 = vld [vmem:[#allocation9 + $0x90] sm:$0xff]  ;;  %v893_v3 = vld [vmem:[#allocation9 + $0x8] sm:$0xff]  ;;  %v892_v5 = vld [vmem:[#allocation9] sm:$0xff] }
  0x25   :  { %585 = vmatpush.bf16.msra.mxu3 %v898_v57  ;;  %v909_v4 = vld [vmem:[#allocation9 + $0x88] sm:$0xff]  ;;  %v908_v6 = vld [vmem:[#allocation9 + $0x80] sm:$0xff]  ;;  %v918_v8 = vld [vmem:[#allocation2 + $0x10] sm:$0xf0] }
  0x26   :  { %352 = vmatpush.bf16.msra.mxu2 %v885_v13  ;;  %v767_v7 = vld [vmem:[#allocation2 + $0x8] sm:$0xf]  ;;  %v929_v10 = vld [vmem:[%s1136_s4] ss:$0 sm:$0xff] }
  0x27   :  { %338 = vmatpush.bf16.msra.mxu1 %v877_v28  ;;  %v768_v9 = vor.u32 %v918_v8, %v767_v7 }
  0x28   :  { %175 = vmatpush.bf16.msra.mxu0 %v867_v14 }
  0x29   :  { %586 = vmatpush.bf16.msra.mxu3 %v897_v59 }
  0x2a   :  { %353 = vmatpush.bf16.msra.mxu2 %v884_v23 }
  0x2b   :  { %339 = vmatpush.bf16.msra.mxu1 %v876_v34 }
  0x2c   :  { %176 = vmatpush.bf16.msra.mxu0 %v866_v15 }
  0x2d   :  { %587 = vmatpush.bf16.msra.mxu3 %v896_v61 }
  0x2e   :  { %354 = vmatpush.bf16.msra.mxu2 %v883_v26  ;;  %v930_v26 = vld [vmem:[%s1138_s6] ss:$0 sm:$0xff]  ;;  %s1066_s6 = smov 128  }
  0x2f   :  { %340 = vmatpush.bf16.msra.mxu1 %v875_v36 }
  0x30   :  { %177 = vmatpush.bf16.msra.mxu0 %v865_v16 }
  0x31   :  { %588 = vmatpush.bf16.msra.mxu3 %v895_v63 }
  0x32   :  { %355 = vmatpush.bf16.msra.mxu2 %v882_v29 }
  0x33   :  { %178 = vmatmul.bf16.vlgmr.msra.gmra.mxu0 %v652_v20  ;;  %341 = vmatpush.bf16.msra.mxu1 %v874_v38 }
  0x34   :  { %598 = vmatpush.bf16.msrb.mxu0 %v907_v19 }
  0x35   :  { %356 = vmatmul.bf16.vlgmr.msra.gmra.mxu2 %v692_v33  ;;  %589 = vmatpush.bf16.msra.mxu3 %v894_v1 }
  0x37   :  { %612 = vmatpush.bf16.msrb.mxu1 %v915_v56 }
  0x38   :  { %599 = vmatpush.bf16.msrb.mxu0 %v906_v21 }
  0x39   :  { %590 = vmatpush.bf16.msra.mxu3 %v893_v3 }
  0x3b   :  { %613 = vmatpush.bf16.msrb.mxu1 %v914_v58 }
  0x3c   :  { %600 = vmatpush.bf16.msrb.mxu0 %v905_v24 }
  0x3d   :  { %591 = vmatpush.bf16.msra.mxu3 %v892_v5 }
  0x3f   :  { %614 = vmatpush.bf16.msrb.mxu1 %v913_v60 }
  0x40   :  { %601 = vmatpush.bf16.msrb.mxu0 %v904_v27 }
  0x43   :  { %615 = vmatpush.bf16.msrb.mxu1 %v912_v62 }
  0x44   :  { %602 = vmatpush.bf16.msrb.mxu0 %v903_v30 }
  0x47   :  { %616 = vmatpush.bf16.msrb.mxu1 %v911_v0 }
  0x48   :  { %603 = vmatpush.bf16.msrb.mxu0 %v902_v35 }
  0x4b   :  { %617 = vmatpush.bf16.msrb.mxu1 %v910_v2 }
  0x4c   :  { %604 = vmatpush.bf16.msrb.mxu0 %v901_v37 }
  0x4f   :  { %618 = vmatpush.bf16.msrb.mxu1 %v909_v4 }
  0x50   :  { %605 = vmatpush.bf16.msrb.mxu0 %v900_v39 }
  0x53   :  { %619 = vmatpush.bf16.msrb.mxu1 %v908_v6 }
  0xb0   :  { %v179_v41 = vpop.f32.mrf.mxu0 }
  0xb1   :  { %v180_v42 = vadd.f32 %v928_v40, %v179_v41 }
  0xb3   :  { %v184_v43 = vmax.f32 %v180_v42, 0.0 }
  0xb5   :  { %v186_v44 = vpack.c.bf16 %v184_v43, %v184_v43 }
  0xb7   :  { %188 = vst [vmem:[#allocation2 + $0x4] sm:$0xf] %v186_v44 }
  0xb8   :  { %v181_v45 = vpop.f32.mrf.mxu0  ;;  %v357_v11 = vpop.f32.mrf.mxu2 }
  0xb9   :  { %v182_v46 = vadd.f32 %v928_v40, %v181_v45 }
  0xbb   :  { %v185_v47 = vmax.f32 %v182_v46, 0.0 }
  0xbd   :  { %v187_v48 = vpack.c.bf16 %v185_v47, %v185_v47 }
  0xbe   :  { %v687_v49 = vld [vmem:[#allocation2 + $0x4] sm:$0xf] }
  0xbf   :  { %189 = vst [vmem:[#allocation2 + $0x10] sm:$0xf] %v187_v48  ;;  %v916_v51 = vld [vmem:[#allocation2 + $0x4] sm:$0xf] }
  0xc0   :  { %v359_v19 = vpop.f32.mrf.mxu2 }
  0xc6   :  { %v891_v50 = vld [vmem:[#allocation2 + $0xc] sm:$0xf0] }
  0xc7   :  { %v761_v52 = vld [vmem:[#allocation2 + $0xc] sm:$0xf0]  ;;  %v688_v53 = vor.u32 %v891_v50, %v687_v49 }
  0xc8   :  { %v764_v54 = vor.u32 %v916_v51, %v761_v52 }
  0xc9   :  { %342 = vmatmul.bf16.vlgmr.msra.gmra.mxu1 %v688_v53 }
  0xca   :  { %606 = vmatmul.bf16.vlgmr.msrb.gmra.mxu0 %v764_v54 }
  0xd9   :  { %620 = vmatmul.bf16.vlgmr.msrb.gmra.mxu1 %v768_v9 }
 0x146   :  { %v343_v12 = vpop.f32.mrf.mxu1 }
 0x147   :  { %v344_v13 = vadd.f32 %v929_v10, %v343_v12  ;;  %v607_v27 = vpop.f32.mrf.mxu0 }
 0x149   :  { %v358_v14 = vadd.f32 %v357_v11, %v344_v13 }
 0x14b   :  { %v362_v15 = vmax.f32 %v358_v14, 0.0 }
 0x14d   :  { %v364_v16 = vpack.c.bf16 %v362_v15, %v362_v15 }
 0x14e   :  { %v345_v17 = vpop.f32.mrf.mxu1 }
 0x14f   :  { %366 = vst [vmem:[#allocation2] sm:$0xf] %v364_v16  ;;  %v346_v18 = vadd.f32 %v929_v10, %v345_v17  ;;  %v609_v35 = vpop.f32.mrf.mxu0 }
 0x151   :  { %v360_v20 = vadd.f32 %v359_v19, %v346_v18 }
 0x153   :  { %v363_v21 = vmax.f32 %v360_v20, 0.0 }
 0x155   :  { %v365_v22 = vpack.c.bf16 %v363_v21, %v363_v21 }
 0x156   :  { %v759_v23 = vld [vmem:[#allocation2] sm:$0xf]  ;;  %v621_v30 = vpop.f32.mrf.mxu1 }
 0x157   :  { %367 = vst [vmem:[#allocation2 + $0xc] sm:$0xf] %v365_v22 }
 0x15e   :  { %v917_v24 = vld [vmem:[#allocation2 + $0x8] sm:$0xf0]  ;;  %v623_v37 = vpop.f32.mrf.mxu1 }
 0x15f   :  { %v760_v25 = vor.u32 %v917_v24, %v759_v23 }
 0x161   :  { %592 = vmatmul.bf16.vlgmr.msra.gmra.mxu3 %v760_v25 }
 0x1e4   :  { %v593_v28 = vpop.f32.mrf.mxu3 }
 0x1e5   :  { %v594_v29 = vadd.f32 %v930_v26, %v593_v28 }
 0x1e7   :  { %v608_v31 = vadd.f32 %v607_v27, %v594_v29 }
 0x1e9   :  { %v622_v32 = vadd.f32 %v621_v30, %v608_v31 }
 0x1eb   :  { %626 = vst [vmem:[#allocation11] sm:$0xff] %v622_v32 }
 0x1ec   :  { %v595_v33 = vpop.f32.mrf.mxu3 }
 0x1ed   :  { %v596_v34 = vadd.f32 %v930_v26, %v595_v33 }
 0x1ef   :  { %v610_v36 = vadd.f32 %v609_v35, %v596_v34 }
 0x1f1   :  { %v624_v38 = vadd.f32 %v623_v37, %v610_v36 }
 0x1f3   :  { %627 = vst [vmem:[#allocation11 + $0x8] sm:$0xff] %v624_v38 }
 0x1f4   :  { %640 = dma.vmem_to_hbm [thread:$0]  %s633_s24, 256, %s635_s27, [#allocation5], %s1066_s6, %s1066_s6, %s1067_s28  }
 0x1f5   :  { %1057 = dma.done.wait [#allocation5], 256  }
 0x1f6   :  { %1058 = vsyncadd [#allocation5], 4294967040 }
 0x1f7   :  { %645 = vsyncpa [#allocation4], 1 }
 0x1f8   :  { %646 = vsyncpa [#allocation7], 1 }
 0x1f9   :  { %647 = vsyncpa [#allocation10], 1 }
 0x1fa   :  { %648 = vsyncpa [#allocation5], 1 }

</bundles_post_ra>
